<compile_context>
chip_gen: v7x
topology: tpu7x:2x2x1
jax: 0.10.0
libtpu: 0.0.40
codegen_flags: <defaults>
</compile_context>

<pallas_src>
import functools
import math

import jax
import jax.numpy as jnp
from jax import lax
from jax.experimental import pallas as pl
from jax.experimental.pallas import tpu as pltpu

_LANE = 128
_NEG_INF = -1e30


def _round_up(x, m):
    return (x + m - 1) // m * m


def _choose_blocks(t):
    """Return (block_q, block_kv): decoupled, MXU/overhead-aware tile sizes."""
    if t <= 128:
        b = _round_up(max(t, 8), 8)          # single 8-aligned tile
        return b, b
    # kv blocks in multiples of 256 fill the 256-wide MXUs (v6e/v7x); 512 for
    # long sequences amortizes the ~0.35us per-grid-step pipeline overhead.
    bkv = 512 if t >= 2048 else 256
    t_pad = _round_up(t, bkv)
    # block_q: largest divisor of bkv in {512,256,128} keeping >=2 q tiles
    # (v7x has 2 TensorCores and only the parallel q axis is sharded).
    for bq in (512, 256, 128):
        if bq <= bkv and t_pad // bq >= 2:
            return bq, bkv
    return 128, bkv


# ---------------------------------------------------------------------------
# Kernel 1: fused QKV projection (one MXU matmul instead of three).
# ---------------------------------------------------------------------------
def _qkv_proj_kernel(x_ref, w_ref, qkv_ref):
    # Operands arrive pre-cast to the compute dtype; contract d_in of both
    # (weights stay in native [d_out, d_in] layout -> no transpose anywhere).
    qkv = lax.dot_general(x_ref[...], w_ref[...],
                          dimension_numbers=(((1,), (1,)), ((), ())),
                          preferred_element_type=jnp.float32)
    qkv_ref[...] = qkv.astype(qkv_ref.dtype)      # [tile, 3*DP], lane-dense


# ---------------------------------------------------------------------------
# Kernel 2: flash-style attention with online softmax.
# ---------------------------------------------------------------------------
def _flash_attn_kernel(q_ref, k_ref, v_ref, bias_ref, o_ref,
                       m_ref, l_ref, acc_ref, *,
                       mask_keys, approx_recip, compute_dtype):
    j = pl.program_id(1)

    @pl.when(j == 0)
    def _init():
        m_ref[...] = jnp.full(m_ref.shape, _NEG_INF, jnp.float32)
        l_ref[...] = jnp.zeros(l_ref.shape, jnp.float32)
        acc_ref[...] = jnp.zeros(acc_ref.shape, jnp.float32)

    # q already carries the 1/sqrt(d_out) scale (folded into W_q at pack time).
    # Contract the head dim of q and k directly (no k.T / XLU transpose).
    s = lax.dot_general(q_ref[...], k_ref[...],
                        dimension_numbers=(((1,), (1,)), ((), ())),
                        preferred_element_type=jnp.float32)     # [bq, bkv]
    if mask_keys:                 # static flag: only emitted when T was padded
        s = s + bias_ref[...]     # (1, bkv) additive 0 / -1e30 key mask

    m_prev = m_ref[...]
    m_new = jnp.maximum(m_prev, jnp.max(s, axis=-1, keepdims=True))
    alpha = jnp.exp(m_prev - m_new)
    p = jnp.exp(s - m_new)
    l_ref[...] = alpha * l_ref[...] + jnp.sum(p, axis=-1, keepdims=True)
    acc_ref[...] = alpha * acc_ref[...] + jnp.dot(
        p.astype(compute_dtype), v_ref[...],
        preferred_element_type=jnp.float32)
    m_ref[...] = m_new

    @pl.when(j == pl.num_programs(1) - 1)
    def _finalize():
        inv_l = pl.reciprocal(l_ref[...], approx=approx_recip)   # EUP slot
        o_ref[...] = (acc_ref[...] * inv_l).astype(o_ref.dtype)


# ---------------------------------------------------------------------------
# Host-side weight packing (hoist out of the per-step forward path).
# ---------------------------------------------------------------------------
def pack_qkv_weights(w_query, w_key, w_value, *, compute_dtype=jnp.bfloat16):
    """Pack the three nn.Linear weights (native [d_out, d_in] layout) into one
    zero-padded, pre-cast, pre-scaled [3*roundup(d_out,128), d_in] slab."""
    d_out, d_in = w_query.shape
    dp = _round_up(d_out, _LANE)
    scale = 1.0 / math.sqrt(d_out)               # == keys.shape[-1] ** 0.5
    w = jnp.zeros((3 * dp, d_in), compute_dtype)
    w = w.at[0:d_out].set((w_query * scale).astype(compute_dtype))  # scale folded
    w = w.at[dp:dp + d_out].set(w_key.astype(compute_dtype))
    w = w.at[2 * dp:2 * dp + d_out].set(w_value.astype(compute_dtype))
    return w


def self_attention_v2_fwd(x, w_qkv, d_out, *, compute_dtype=jnp.bfloat16):
    """Forward pass given a pre-packed weight slab. Returns [T, d_out] f32."""
    t, d_in = x.shape
    dp = w_qkv.shape[0] // 3
    cdsize = jnp.dtype(compute_dtype).itemsize

    bq, bkv = _choose_blocks(t)
    t_pad = _round_up(t, bkv)
    # Invariant: the last kv tile always contains at least one real key.
    assert t_pad % bq == 0 and 0 <= t_pad - t < bkv
    n_q, n_kv = t_pad // bq, t_pad // bkv
    tile1 = bkv                                   # projection tile (mem-bound)
    mask_keys = t_pad != t

    # Host glue: pad + pre-cast activations, build the additive key-pad bias.
    x_p = x.astype(compute_dtype)
    if mask_keys:
        x_p = jnp.pad(x_p, ((0, t_pad - t), (0, 0)))
    kv_bias = jnp.zeros((1, t_pad), jnp.float32)
    if mask_keys:
        kv_bias = kv_bias.at[:, t:].set(_NEG_INF)

    # Explicit VMEM budgets (double-buffered blocks + scratch) with headroom;
    # floor above v5e's 16 MiB scoped default, ceiling under v7x's 64 MiB.
    k1_need = (2 * tile1 * d_in * cdsize          # x blocks
               + 2 * 3 * dp * d_in * cdsize       # resident weight slab (2x buf)
               + 2 * tile1 * 3 * dp * cdsize)     # qkv output blocks
    k1_vmem = int(min(max(2 * k1_need + (4 << 20), 32 << 20), 48 << 20))
    k2_need = (2 * bq * dp * cdsize               # q blocks
               + 2 * 2 * bkv * dp * cdsize        # k + v blocks
               + 2 * bkv * 4                      # bias blocks
               + 2 * bq * dp * cdsize             # out blocks
               + bq * dp * 4 + 2 * bq * 4)        # acc + m + l scratch
    k2_vmem = int(min(max(2 * k2_need + (4 << 20), 32 << 20), 48 << 20))

    # ---- kernel 1: fused QKV projection -------------------------------------
    qkv = pl.pallas_call(
        _qkv_proj_kernel,
        out_shape=jax.ShapeDtypeStruct((t_pad, 3 * dp), compute_dtype),
        grid=(t_pad // tile1,),
        in_specs=[
            pl.BlockSpec((tile1, d_in), lambda i: (i, 0)),
            # TODO(synk): for very large d_in, tile d_in with an "arbitrary"
            # reduction axis + f32 scratch instead of a resident weight slab.
            pl.BlockSpec((3 * dp, d_in), lambda i: (0, 0)),
        ],
        out_specs=pl.BlockSpec((tile1, 3 * dp), lambda i: (i, 0)),
        compiler_params=pltpu.CompilerParams(
            dimension_semantics=("parallel",),
            vmem_limit_bytes=k1_vmem),
    )(x_p, w_qkv)

    # ---- kernel 2: flash attention over (q tiles, kv tiles) -----------------
    kernel = functools.partial(
        _flash_attn_kernel,
        mask_keys=mask_keys,
        approx_recip=(jnp.dtype(compute_dtype) != jnp.dtype(jnp.float32)),
        compute_dtype=compute_dtype)
    out_p = pl.pallas_call(
        kernel,
        out_shape=jax.ShapeDtypeStruct((t_pad, dp), compute_dtype),
        grid=(n_q, n_kv),
        in_specs=[
            pl.BlockSpec((bq, dp), lambda i, j: (i, 0)),      # q tile
            pl.BlockSpec((bkv, dp), lambda i, j: (j, 1)),     # k tile
            pl.BlockSpec((bkv, dp), lambda i, j: (j, 2)),     # v tile
            pl.BlockSpec((1, bkv), lambda i, j: (0, j)),      # key-pad bias row
        ],
        out_specs=pl.BlockSpec((bq, dp), lambda i, j: (i, 0)),
        scratch_shapes=[
            pltpu.VMEM((bq, 1), jnp.float32),      # running max   m_i
            pltpu.VMEM((bq, 1), jnp.float32),      # running denom l_i
            pltpu.VMEM((bq, dp), jnp.float32),     # output accumulator
        ],
        compiler_params=pltpu.CompilerParams(
            dimension_semantics=("parallel", "arbitrary"),
            vmem_limit_bytes=k2_vmem),
    )(qkv, qkv, qkv, kv_bias)

    return out_p[:t, :d_out].astype(jnp.float32)


def self_attention_v2(x, w_query, w_key, w_value, *, compute_dtype=jnp.bfloat16):
    """Convenience wrapper; in real use, cache pack_qkv_weights() across steps."""
    w_qkv = pack_qkv_weights(w_query, w_key, w_value, compute_dtype=compute_dtype)
    return self_attention_v2_fwd(x, w_qkv, w_query.shape[0],
                                 compute_dtype=compute_dtype)


def _reference(x, w_query, w_key, w_value):
    # Pure-JAX reference matching the PyTorch forward exactly.
    q = x @ w_query.T
    k = x @ w_key.T
    v = x @ w_value.T
    scores = q @ k.T
    w = jax.nn.softmax(scores / (k.shape[-1] ** 0.5), axis=1)
    return w @ v


if __name__ == "__main__":
    root = jax.random.PRNGKey(0)

    def run_case(idx, t, d_in, d_out, compute_dtype, tol):
        key = jax.random.fold_in(root, idx)
        kx, kq, kk, kv = jax.random.split(key, 4)
        x = jax.random.normal(kx, (t, d_in), jnp.float32)
        bound = 1.0 / math.sqrt(d_in)   # nn.Linear default init range
        wq = jax.random.uniform(kq, (d_out, d_in), jnp.float32, -bound, bound)
        wk = jax.random.uniform(kk, (d_out, d_in), jnp.float32, -bound, bound)
        wv = jax.random.uniform(kv, (d_out, d_in), jnp.float32, -bound, bound)

        # Pack once (hoisted), then run the forward kernels.
        w_qkv = pack_qkv_weights(wq, wk, wv, compute_dtype=compute_dtype)
        out = jax.block_until_ready(
            self_attention_v2_fwd(x, w_qkv, d_out, compute_dtype=compute_dtype))
        ref = _reference(x, wq, wk, wv)
        assert out.shape == (t, d_out), out.shape
        err = float(jnp.max(jnp.abs(out - ref)))
        assert err <= tol, (t, d_in, d_out, str(compute_dtype), err)

    # Module-implied small shapes: seq=8, d_in=32, d_out=1.
    run_case(0, 8, 32, 1, jnp.float32, 1e-2)     # full-precision operand path
    run_case(1, 8, 32, 1, jnp.bfloat16, 5e-2)    # bf16 MXU operands (default)
    run_case(2, 13, 32, 1, jnp.bfloat16, 5e-2)   # exercises key-padding mask
    run_case(3, 200, 32, 4, jnp.bfloat16, 5e-2)  # multi-tile grid + online softmax

    print("KERNEL_OK")
</pallas_src>

<mosaic_0001>
module attributes {stable_mosaic.version = 11 : i64} {
  func.func @_qkv_proj_kernel(%arg0: i32, %arg1: memref<8x32xf32, #tpu.memory_space<vmem>>, %arg2: memref<384x32xf32, #tpu.memory_space<vmem>>, %arg3: memref<8x384xf32, #tpu.memory_space<vmem>>) attributes {dimension_semantics = [#tpu.dimension_semantics<parallel>], iteration_bounds = array<i64: 1>, scalar_prefetch = 0 : i64, scratch_operands = 0 : i64, tpu.core_type = #tpu.core_type<tc>, window_params = [{transform_indices = @transform_0, window_bounds = array<i64: 8, 32>}, {pipeline_mode = #tpu.pipeline_mode<synchronous>, transform_indices = @transform_1, window_bounds = array<i64: 384, 32>}, {transform_indices = @transform_2, window_bounds = array<i64: 8, 384>}]} {
    %c0 = arith.constant 0 : index
    %c0_0 = arith.constant 0 : index
    %0 = vector.load %arg1[%c0, %c0_0] : memref<8x32xf32, #tpu.memory_space<vmem>>, vector<8x32xf32>
    %c0_1 = arith.constant 0 : index
    %c0_2 = arith.constant 0 : index
    %1 = vector.load %arg2[%c0_1, %c0_2] : memref<384x32xf32, #tpu.memory_space<vmem>>, vector<384x32xf32>
    %cst = arith.constant dense<0.000000e+00> : vector<8x384xf32>
    %2 = tpu.matmul %0, %1, %cst {dimension_numbers = #tpu.dot_dimension_numbers<[1], [1], [0], [0], [0, 0, 1, 0], [], []>} : vector<8x32xf32>, vector<384x32xf32>, vector<8x384xf32> -> vector<8x384xf32>
    %c0_3 = arith.constant 0 : index
    %c0_4 = arith.constant 0 : index
    %3 = vector.load %arg3[%c0_3, %c0_4] : memref<8x384xf32, #tpu.memory_space<vmem>>, vector<8x384xf32>
    tpu.vector_store %arg3[%c0_3, %c0_4], %2 {strides = array<i32>} : memref<8x384xf32, #tpu.memory_space<vmem>>, vector<8x384xf32>,
    return
  }
  func.func @transform_0(%arg0: i32) -> (i32, i32) {
    %c0_i32 = arith.constant 0 : i32
    %c0_i32_0 = arith.constant 0 : i32
    return %arg0, %c0_i32 : i32, i32
  }
  func.func @transform_1(%arg0: i32) -> (i32, i32) {
    %c0_i32 = arith.constant 0 : i32
    %c0_i32_0 = arith.constant 0 : i32
    %c0_i32_1 = arith.constant 0 : i32
    return %c0_i32, %c0_i32_0 : i32, i32
  }
  func.func @transform_2(%arg0: i32) -> (i32, i32) {
    %c0_i32 = arith.constant 0 : i32
    %c0_i32_0 = arith.constant 0 : i32
    return %arg0, %c0_i32 : i32, i32
  }
}

</mosaic_0001>

<bundles_post_ra>
// kernel: tpu_custom_call.1
= control target key start
LH: loop header
LB: loop body
LE: loop exit
PB: predicated region body
PF: predicated region fallthrough
CT: control target
= control target key end

     0   :  { %vm61_vm0 = vcmask 261120   ;;  %v611_v5 = vmov 0.0|0.0   ;;  %vm612_vm2 = vmmov 0   ;;  %v613_v12 = vmov 0.0   ;;  %s859_s0 = inlined_call_operand.vmem [shape: f32[8,32], index: 0, kind: input, shape index: {}]   ;;  %s860_s1 = inlined_call_operand.vmem [shape: f32[384,32], index: 1, kind: input, shape index: {}]   ;;  %s861_s2 = inlined_call_operand.hbm [shape: f32[8,384], index: 2, kind: output, shape index: {}]  }
   0x1   :  { %v29_v0 = vld [vmem:[%s860_s1 + $0x80] sm:$0xff]  ;;  %v30_v1 = vld [vmem:[%s860_s1 + $0x88] sm:$0xff]  ;;  %vm641_vm1 = vmpackc.low %vm61_vm0, %vm61_vm0  ;;  %551 = vmatprep.subr.bf16.mxu1 %v611_v5  ;;  %500 = vmatprep.mubr.msk.f32.mxu1 %vm612_vm2, %v613_v12 }
   0x2   :  { %v13_v2 = vld [vmem:[%s860_s1] sm:$0xff]  ;;  %v503_v3 = vpack.c.bf16 %v30_v1, %v29_v0  ;;  %v14_v6 = vld [vmem:[%s860_s1 + $0x8] sm:$0xff]  ;;  %v31_v10 = vld [vmem:[%s860_s1 + $0x90] sm:$0xff] }
   0x3   :  { %v45_v7 = vld [vmem:[%s860_s1 + $0x100] sm:$0xff]  ;;  %v506_v8 = vpack.c.bf16 %v14_v6, %v13_v2  ;;  %v46_v9 = vld [vmem:[%s860_s1 + $0x108] sm:$0xff]  ;;  %v32_v11 = vld [vmem:[%s860_s1 + $0x98] sm:$0xff] }
   0x4   :  { %505 = vmatprep.subr.msk.bf16.mxu0 %vm641_vm1, %v503_v3  ;;  %v552_v13 = vpack.c.bf16 %v46_v9, %v45_v7  ;;  %v509_v14 = vpack.c.bf16 %v32_v11, %v31_v10  ;;  %v15_v15 = vld [vmem:[%s860_s1 + $0x10] sm:$0xff]  ;;  %v16_v16 = vld [vmem:[%s860_s1 + $0x18] sm:$0xff]  ;;  %v33_v19 = vld [vmem:[%s860_s1 + $0xa0] sm:$0xff] }
   0x5   :  { %508 = vmatpush3.bf16.xpose.msk.msra.mxu0 %vm641_vm1, %v506_v8  ;;  %v47_v17 = vld [vmem:[%s860_s1 + $0x110] sm:$0xff]  ;;  %v48_v18 = vld [vmem:[%s860_s1 + $0x118] sm:$0xff]  ;;  %v34_v20 = vld [vmem:[%s860_s1 + $0xa8] sm:$0xff]  ;;  %v512_v21 = vpack.c.bf16 %v16_v16, %v15_v15 }
   0x6   :  { %554 = vmatpush3.bf16.xpose.msk.msra.mxu1 %vm641_vm1, %v552_v13  ;;  %511 = vmatprep.subr.msk.bf16.mxu0 %vm641_vm1, %v509_v14  ;;  %v556_v22 = vpack.c.bf16 %v48_v18, %v47_v17  ;;  %v515_v23 = vpack.c.bf16 %v34_v20, %v33_v19  ;;  %v17_v24 = vld [vmem:[%s860_s1 + $0x20] sm:$0xff]  ;;  %v18_v25 = vld [vmem:[%s860_s1 + $0x28] sm:$0xff]  ;;  %v35_v28 = vld [vmem:[%s860_s1 + $0xb0] sm:$0xff] }
   0x7   :  { %555 = vmatprep.subr.bf16.mxu1 %v611_v5  ;;  %v49_v26 = vld [vmem:[%s860_s1 + $0x120] sm:$0xff]  ;;  %v50_v27 = vld [vmem:[%s860_s1 + $0x128] sm:$0xff]  ;;  %v36_v29 = vld [vmem:[%s860_s1 + $0xb8] sm:$0xff]  ;;  %v518_v30 = vpack.c.bf16 %v18_v25, %v17_v24 }
   0x8   :  { %v716_v31 = vld [vmem:[%s859_s0] sm:$0xff] }
   0xd   :  { %514 = vmatpush3.bf16.xpose.msk.msra.mxu0 %vm641_vm1, %v512_v21 }
   0xe   :  { %558 = vmatpush3.bf16.xpose.msk.msra.mxu1 %vm641_vm1, %v556_v22  ;;  %517 = vmatprep.subr.msk.bf16.mxu0 %vm641_vm1, %v515_v23 }
   0xf   :  { %559 = vmatprep.subr.bf16.mxu1 %v611_v5 }
  0x10   :  { %7 = vsyncpa [#allocation3], 0  ;;  %v560_v32 = vpack.c.bf16 %v50_v27, %v49_v26  ;;  %v521_v33 = vpack.c.bf16 %v36_v29, %v35_v28  ;;  %449 = vmatprep.mubr.msk.f32.mxu0 %vm61_vm0, %v716_v31  ;;  %v19_v34 = vld [vmem:[%s860_s1 + $0x30] sm:$0xff]  ;;  %v20_v35 = vld [vmem:[%s860_s1 + $0x38] sm:$0xff]  ;;  %s614_s21 = smov [#allocation2]  }
  0x11   :  { %v51_v36 = vld [vmem:[%s860_s1 + $0x130] sm:$0xff]  ;;  %v52_v37 = vld [vmem:[%s860_s1 + $0x138] sm:$0xff]  ;;  %v37_v38 = vld [vmem:[%s860_s1 + $0xc0] sm:$0xff]  ;;  %v524_v40 = vpack.c.bf16 %v20_v35, %v19_v34  ;;  %s359_s22 = sshll.u32 %s614_s21, 4  ;;  %s360_s22 = int_to_ptr.vmem [resolvable:$true] %s359_s22 }
  0x12   :  { %v38_v39 = vld [vmem:[%s860_s1 + $0xc8] sm:$0xff]  ;;  %v564_v41 = vpack.c.bf16 %v52_v37, %v51_v36  ;;  %v21_v43 = vld [vmem:[%s860_s1 + $0x40] sm:$0xff]  ;;  %v39_v47 = vld [vmem:[%s860_s1 + $0xd0] sm:$0xff]  ;;  %p592_p1 = scmp.lt.s32.totalorder %s360_s22, %s360_s22 }
  0x13   :  { %v527_v42 = vpack.c.bf16 %v38_v39, %v37_v38  ;;  %v22_v44 = vld [vmem:[%s860_s1 + $0x48] sm:$0xff]  ;;  %v53_v45 = vld [vmem:[%s860_s1 + $0x140] sm:$0xff]  ;;  %v40_v48 = vld [vmem:[%s860_s1 + $0xd8] sm:$0xff] }
  0x14   :  { %v54_v46 = vld [vmem:[%s860_s1 + $0x148] sm:$0xff]  ;;  %v530_v49 = vpack.c.bf16 %v22_v44, %v21_v43  ;;  %v533_v51 = vpack.c.bf16 %v40_v48, %v39_v47  ;;  %v23_v52 = vld [vmem:[%s860_s1 + $0x50] sm:$0xff]  ;;  %v24_v53 = vld [vmem:[%s860_s1 + $0x58] sm:$0xff] }
  0x15   :  { %520 = vmatpush3.bf16.xpose.msk.msra.mxu0 %vm641_vm1, %v518_v30  ;;  %v568_v50 = vpack.c.bf16 %v54_v46, %v53_v45  ;;  %v55_v54 = vld [vmem:[%s860_s1 + $0x150] sm:$0xff]  ;;  %v56_v55 = vld [vmem:[%s860_s1 + $0x158] sm:$0xff]  ;;  %v41_v56 = vld [vmem:[%s860_s1 + $0xe0] sm:$0xff]  ;;  %v536_v58 = vpack.c.bf16 %v24_v53, %v23_v52 }
  0x16   :  { %562 = vmatpush3.bf16.xpose.msk.msra.mxu1 %vm641_vm1, %v560_v32  ;;  %523 = vmatprep.subr.msk.bf16.mxu0 %vm641_vm1, %v521_v33  ;;  %v42_v57 = vld [vmem:[%s860_s1 + $0xe8] sm:$0xff]  ;;  %v572_v59 = vpack.c.bf16 %v56_v55, %v55_v54  ;;  %v25_v61 = vld [vmem:[%s860_s1 + $0x60] sm:$0xff]  ;;  %v43_v1 = vld [vmem:[%s860_s1 + $0xf0] sm:$0xff] }
  0x17   :  { %563 = vmatprep.subr.bf16.mxu1 %v611_v5  ;;  %v539_v60 = vpack.c.bf16 %v42_v57, %v41_v56  ;;  %v26_v62 = vld [vmem:[%s860_s1 + $0x68] sm:$0xff]  ;;  %v57_v63 = vld [vmem:[%s860_s1 + $0x160] sm:$0xff]  ;;  %v44_v2 = vld [vmem:[%s860_s1 + $0xf8] sm:$0xff] }
  0x18   :  { %v58_v0 = vld [vmem:[%s860_s1 + $0x168] sm:$0xff]  ;;  %v542_v3 = vpack.c.bf16 %v26_v62, %v25_v61  ;;  %v545_v7 = vpack.c.bf16 %v44_v2, %v43_v1  ;;  %v27_v8 = vld [vmem:[%s860_s1 + $0x70] sm:$0xff]  ;;  %v28_v9 = vld [vmem:[%s860_s1 + $0x78] sm:$0xff] }
  0x19   :  { %v576_v6 = vpack.c.bf16 %v58_v0, %v57_v63  ;;  %v59_v10 = vld [vmem:[%s860_s1 + $0x170] sm:$0xff]  ;;  %v60_v11 = vld [vmem:[%s860_s1 + $0x178] sm:$0xff]  ;;  %v548_v12 = vpack.c.bf16 %v28_v9, %v27_v8  ;;  %s587_s1 = scalar_lea.vmem %s360_s22, 384 }
  0x1a   :  { %v580_v13 = vpack.c.bf16 %v60_v11, %v59_v10  ;;  %p588_p0 = scmp.ne.s32.totalorder %s360_s22, %s587_s1  ;;  %p593_p2 = scmp.lt.s32.totalorder %s587_s1, %s587_s1 }
  0x1c   :  { %p594_p3 = por %p593_p2, %p592_p1 }
  0x1d   :  { %526 = vmatpush3.bf16.xpose.msk.msra.mxu0 %vm641_vm1, %v524_v40 }
  0x1e   :  { %566 = vmatpush3.bf16.xpose.msk.msra.mxu1 %vm641_vm1, %v564_v41  ;;  %529 = vmatprep.subr.msk.bf16.mxu0 %vm641_vm1, %v527_v42  ;;  %p595_p4 = pnand %p594_p3, %p588_p0 }
  0x1f   :  { %567 = vmatprep.subr.bf16.mxu1 %v611_v5 }
  0x25   :  { %532 = vmatpush3.bf16.xpose.msk.msra.mxu0 %vm641_vm1, %v530_v49 }
  0x26   :  { %570 = vmatpush3.bf16.xpose.msk.msra.mxu1 %vm641_vm1, %v568_v50  ;;  %535 = vmatprep.subr.msk.bf16.mxu0 %vm641_vm1, %v533_v51 }
  0x27   :  { %571 = vmatprep.subr.bf16.mxu1 %v611_v5 }
  0x2d   :  { %538 = vmatpush3.bf16.xpose.msk.msra.mxu0 %vm641_vm1, %v536_v58 }
  0x2e   :  { %574 = vmatpush3.bf16.xpose.msk.msra.mxu1 %vm641_vm1, %v572_v59  ;;  %541 = vmatprep.subr.msk.bf16.mxu0 %vm641_vm1, %v539_v60 }
  0x2f   :  { %575 = vmatprep.subr.bf16.mxu1 %v611_v5 }
  0x35   :  { %544 = vmatpush3.bf16.xpose.msk.msra.mxu0 %vm641_vm1, %v542_v3 }
  0x36   :  { %578 = vmatpush3.bf16.xpose.msk.msra.mxu1 %vm641_vm1, %v576_v6  ;;  %547 = vmatprep.subr.msk.bf16.mxu0 %vm641_vm1, %v545_v7 }
  0x37   :  { %579 = vmatprep.subr.bf16.mxu1 %v611_v5 }
  0x3d   :  { %550 = vmatpush3.bf16.xpose.msk.msra.mxu0 %vm641_vm1, %v548_v12 }
  0x3e   :  { %582 = vmatpush3.bf16.xpose.msk.msra.mxu1 %vm641_vm1, %v580_v13 }
  0x44   :  { %450 = vmatmul.mubr.msk.f32.vlgmr.msra.gmra.mrb[0].mxu0 %vm61_vm0, %v716_v31 }
  0x45   :  { %501 = vmatmul.mubr.msk.f32.vlgmr.msra.gmra.mrb[0].mxu1 %vm61_vm0, %v716_v31 }
 0x117   :  { %v275_v5 = vpop.f32.mrb[0].mxu0 }
 0x118   :  { %350 = vst [vmem:[#allocation2] sm:$0xff] %v275_v5  ;;  %v346_v14 = vpop.f32.mrb[0].mxu1  ;;  %v277_v15 = vpop.f32.mrb[1].mxu0 }
 0x119   :  { %352 = vst [vmem:[#allocation2 + $0x10] sm:$0xff] %v346_v14  ;;  %351 = vst [vmem:[#allocation2 + $0x8] sm:$0xff] %v277_v15  ;;  %v502_v16 = vpop.f32.mrb[1].mxu1 }
 0x11a   :  { %598 = shalt.err (!%p595_p4)
}
 0x11b   :  { %s599_s0 = scalar_lea.hbm %s861_s2, 384 }
 0x11c   :  { %p600_p5 = scmp.ne.s32.totalorder %s861_s2, %s599_s0  ;;  %p603_p6 = scmp.lt.u32.totalorder %s599_s0, %s861_s2 }
 0x11e   :  { %p605_p7 = pnand %p603_p6, %p600_p5 }
 0x120   :  { %608 = shalt.err (!%p605_p7)
}
 0x121   :  { %362 = dma.vmem_to_hbm [thread:$0]  %s360_s22, 384, %s861_s2, [#allocation3]  }
 0x122   :  { %609 = dma.done.wait [#allocation3], 384  }
 0x123   :  { %610 = vsyncadd [#allocation3], 4294966912 }
 0x124   :  { %366 = vsyncpa [#allocation3], 1 }

</bundles_post_ra>
